<compile_context>
chip_gen: v7x
topology: tpu7x:2x2x1
jax: 0.10.0
libtpu: 0.0.40
codegen_flags: <defaults>
</compile_context>

<pallas_src>
import jax
import jax.numpy as jnp
from jax.experimental import pallas as pl
from jax.experimental.pallas import tpu as pltpu


def mlp_kernel(x_ref, w1_ref, b1_ref, w2_ref, b2_ref, o_ref):
    # Cast x to bf16 in-kernel (f32 HBM stream, no separate wrapper convert pass).
    xb = x_ref[...].astype(jnp.bfloat16)

    # hidden = ReLU(x @ W1 + b1)   -- bf16 MXU operands, f32 accumulate
    h = jnp.dot(xb, w1_ref[...], preferred_element_type=jnp.float32)
    h = jnp.maximum(h + b1_ref[...], 0.0)            # (TB, 256) + (1, 256)

    # logits = h @ W2 + b2         -- bf16 MXU operands, f32 accumulate
    logits = jnp.dot(h.astype(jnp.bfloat16), w2_ref[...],
                     preferred_element_type=jnp.float32)
    logits = logits + b2_ref[...]                    # (TB, 10) + (1, 10)

    # LogSoftmax(dim=1), numerically stable, f32 on VPU/EUP over the 10 real logits.
    m = jnp.max(logits, axis=1, keepdims=True)
    shifted = logits - m
    lse = jnp.log(jnp.sum(jnp.exp(shifted), axis=1, keepdims=True))
    o_ref[...] = shifted - lse


def _pad_to(a, shape):
    pads = [(0, t - s) for s, t in zip(a.shape, shape)]
    return jnp.pad(a, pads)


def network_mnist_forward(x, w1, b1, w2, b2, *, tb=2048):
    """x: (B, 784) f32 (or bf16); w1: (784, 200); b1: (1, 200); w2: (200, 10); b2: (1, 10).

    Weights are stored pre-transposed as (in_features, out_features).
    Returns (B, 10) f32 log-probabilities.
    """
    B, F = x.shape
    H1 = w1.shape[1]
    H2 = w2.shape[1]
    H1P = ((H1 + 127) // 128) * 128                  # 200 -> 256 lane-aligned hidden

    # Weight prep is ~0.6 MB once per call; in a real pipeline convert once outside.
    # Zero-padding the hidden dim is inert: padded w1 cols & b1 entries are 0 ->
    # ReLU(0)=0, and the padded w2 rows are 0.
    w1p = _pad_to(w1, (F, H1P)).astype(jnp.bfloat16)
    b1p = _pad_to(b1, (1, H1P)).astype(jnp.float32)
    w2p = _pad_to(w2, (H1P, H2)).astype(jnp.bfloat16)
    b2p = b2.astype(jnp.float32)

    # Batch tiling: TB rows per grid step.  No explicit batch pad -- Pallas masks
    # the stores of the final partial block; its out-of-range rows are garbage but
    # never written back / consumed.
    TB = min(tb, B)
    n_tiles = pl.cdiv(B, TB)

    # x stream spec: triple-buffer the DMA when there are multiple steps (the x
    # DMA is the exposed critical resource; compute per step is much shorter).
    if n_tiles >= 2:
        x_spec = pl.BlockSpec((TB, F), lambda i: (i, 0), pipeline_mode=pl.Buffered(3))
        n_x_buffers = 3
    else:
        x_spec = pl.BlockSpec((TB, F), lambda i: (i, 0))
        n_x_buffers = 2

    # VMEM budget (v5e's default scoped limit of 16 MiB is too small for TB=2048
    # with a triple-buffered f32 x stream); cap under v7x's 64 MiB physical VMEM.
    x_item = jnp.dtype(x.dtype).itemsize
    vmem_need = (
        n_x_buffers * TB * F * x_item                       # x stream buffers
        + 2 * (w1p.size + w2p.size) * 2                     # bf16 weights
        + 2 * (b1p.size + b2p.size) * 4                     # f32 biases
        + 2 * TB * H2 * 4                                   # output double buffer
        + TB * (F * 2 + H1P * 6 + H2 * 16)                  # in-kernel temporaries
    )
    vmem_limit = int(min(max(vmem_need * 5 // 4, 32 * 1024 * 1024),
                         56 * 1024 * 1024))

    cost = pl.CostEstimate(
        flops=2 * B * (F * H1P + H1P * H2),
        transcendentals=B * H2,                             # exp in log-softmax
        bytes_accessed=(x.size * x_item
                        + (w1p.size + w2p.size) * 2
                        + (b1p.size + b2p.size) * 4
                        + B * H2 * 4),
    )

    out = pl.pallas_call(
        mlp_kernel,
        out_shape=jax.ShapeDtypeStruct((B, H2), jnp.float32),
        grid_spec=pltpu.PrefetchScalarGridSpec(
            num_scalar_prefetch=0,
            grid=(n_tiles,),
            in_specs=[
                x_spec,                                      # x: streamed per tile
                pl.BlockSpec((F, H1P), lambda i: (0, 0)),    # weights: VMEM-resident
                pl.BlockSpec((1, H1P), lambda i: (0, 0)),
                pl.BlockSpec((H1P, H2), lambda i: (0, 0)),
                pl.BlockSpec((1, H2), lambda i: (0, 0)),
            ],
            out_specs=pl.BlockSpec((TB, H2), lambda i: (i, 0)),
        ),
        compiler_params=pltpu.CompilerParams(
            # v7x: batch grid axis shards across the 2 TensorCores; no-op on v5e/v6e.
            dimension_semantics=("parallel",),
            vmem_limit_bytes=vmem_limit,
        ),
        cost_estimate=cost,
    )(x, w1p, b1p, w2p, b2p)

    return out


def init_params(key):
    """Deterministic init mimicking PyTorch nn.Linear default (uniform +-1/sqrt(fan_in)).

    PyTorch weight layout is (out, in); we store the transpose (in, out) for the kernel.
    """
    k1, k2, k3, k4 = jax.random.split(key, 4)
    lim1 = 1.0 / jnp.sqrt(784.0)
    lim2 = 1.0 / jnp.sqrt(200.0)
    w1 = jax.random.uniform(k1, (784, 200), jnp.float32, -lim1, lim1)
    b1 = jax.random.uniform(k2, (1, 200), jnp.float32, -lim1, lim1)
    w2 = jax.random.uniform(k3, (200, 10), jnp.float32, -lim2, lim2)
    b2 = jax.random.uniform(k4, (1, 10), jnp.float32, -lim2, lim2)
    return w1, b1, w2, b2


def reference_forward_bf16(x, w1, b1, w2, b2):
    """Mirrors the kernel's bf16-operand / f32-accumulate matmul path."""
    xb = x.astype(jnp.bfloat16)
    w1b = w1.astype(jnp.bfloat16)
    w2b = w2.astype(jnp.bfloat16)
    h = jnp.maximum(jnp.dot(xb, w1b, preferred_element_type=jnp.float32) + b1, 0.0)
    logits = jnp.dot(h.astype(jnp.bfloat16), w2b,
                     preferred_element_type=jnp.float32) + b2
    return jax.nn.log_softmax(logits, axis=1)


def reference_forward_f32(x, w1, b1, w2, b2):
    h = jnp.maximum(x @ w1 + b1, 0.0)
    logits = h @ w2 + b2
    return jax.nn.log_softmax(logits, axis=1)


if __name__ == "__main__":
    key = jax.random.PRNGKey(0)
    kx, kp, kx2 = jax.random.split(key, 3)

    w1, b1, w2, b2 = init_params(kp)

    # Canonical small test (single tile: block == full array dims).
    B = 2
    x = jax.random.normal(kx, (B, 784), jnp.float32)
    out = jax.block_until_ready(network_mnist_forward(x, w1, b1, w2, b2))
    assert out.shape == (B, 10)

    ref_bf16 = reference_forward_bf16(x, w1, b1, w2, b2)
    assert jnp.allclose(out, ref_bf16, atol=1e-3, rtol=1e-3)
    ref_f32 = reference_forward_f32(x, w1, b1, w2, b2)
    assert jnp.allclose(out, ref_f32, atol=2e-2, rtol=2e-2)

    # Multi-tile test: exercises the streamed x pipeline (Buffered(3)), resident
    # weights across grid steps, and the masked final partial block (600 = 2*256 + 88).
    B2 = 600
    x2 = jax.random.normal(kx2, (B2, 784), jnp.float32)
    out2 = jax.block_until_ready(network_mnist_forward(x2, w1, b1, w2, b2, tb=256))
    assert out2.shape == (B2, 10)
    ref2 = reference_forward_bf16(x2, w1, b1, w2, b2)
    assert jnp.allclose(out2, ref2, atol=1e-3, rtol=1e-3)

    print("KERNEL_OK")
</pallas_src>

<mosaic_0001>
module attributes {stable_mosaic.version = 11 : i64} {
  func.func @mlp_kernel(%arg0: i32, %arg1: memref<2x784xf32, #tpu.memory_space<vmem>>, %arg2: memref<784x256xbf16, #tpu.memory_space<vmem>>, %arg3: memref<1x256xf32, #tpu.memory_space<vmem>>, %arg4: memref<256x10xbf16, #tpu.memory_space<vmem>>, %arg5: memref<1x10xf32, #tpu.memory_space<vmem>>, %arg6: memref<2x10xf32, #tpu.memory_space<vmem>>) attributes {dimension_semantics = [#tpu.dimension_semantics<parallel>], iteration_bounds = array<i64: 1>, scalar_prefetch = 0 : i64, scratch_operands = 0 : i64, tpu.core_type = #tpu.core_type<tc>, window_params = [{transform_indices = @transform_0, window_bounds = array<i64: 2, 784>}, {pipeline_mode = #tpu.pipeline_mode<synchronous>, transform_indices = @transform_1, window_bounds = array<i64: 784, 256>}, {pipeline_mode = #tpu.pipeline_mode<synchronous>, transform_indices = @transform_2, window_bounds = array<i64: 1, 256>}, {pipeline_mode = #tpu.pipeline_mode<synchronous>, transform_indices = @transform_3, window_bounds = array<i64: 256, 10>}, {pipeline_mode = #tpu.pipeline_mode<synchronous>, transform_indices = @transform_4, window_bounds = array<i64: 1, 10>}, {transform_indices = @transform_5, window_bounds = array<i64: 2, 10>}]} {
    %c0 = arith.constant 0 : index
    %c0_0 = arith.constant 0 : index
    %0 = vector.load %arg1[%c0, %c0_0] : memref<2x784xf32, #tpu.memory_space<vmem>>, vector<2x784xf32>
    %1 = arith.truncf %0 : vector<2x784xf32> to vector<2x784xbf16>
    %c0_1 = arith.constant 0 : index
    %c0_2 = arith.constant 0 : index
    %2 = vector.load %arg2[%c0_1, %c0_2] : memref<784x256xbf16, #tpu.memory_space<vmem>>, vector<784x256xbf16>
    %cst = arith.constant dense<0.000000e+00> : vector<2x256xf32>
    %3 = tpu.matmul %1, %2, %cst {dimension_numbers = #tpu.dot_dimension_numbers<[1], [0], [0], [1], [0, 0, 1, 1], [], []>} : vector<2x784xbf16>, vector<784x256xbf16>, vector<2x256xf32> -> vector<2x256xf32>
    %c0_3 = arith.constant 0 : index
    %c0_4 = arith.constant 0 : index
    %4 = vector.load %arg3[%c0_3, %c0_4] : memref<1x256xf32, #tpu.memory_space<vmem>>, vector<1x256xf32>
    %5 = vector.broadcast %4 : vector<1x256xf32> to vector<2x256xf32>
    %6 = arith.addf %3, %5 : vector<2x256xf32>
    %cst_5 = arith.constant 0.000000e+00 : f32
    %7 = vector.broadcast %cst_5 : f32 to vector<2x256xf32>
    %8 = arith.maximumf %6, %7 : vector<2x256xf32>
    %9 = arith.truncf %8 : vector<2x256xf32> to vector<2x256xbf16>
    %c0_6 = arith.constant 0 : index
    %c0_7 = arith.constant 0 : index
    %10 = vector.load %arg4[%c0_6, %c0_7] : memref<256x10xbf16, #tpu.memory_space<vmem>>, vector<256x10xbf16>
    %cst_8 = arith.constant dense<0.000000e+00> : vector<2x10xf32>
    %11 = tpu.matmul %9, %10, %cst_8 {dimension_numbers = #tpu.dot_dimension_numbers<[1], [0], [0], [1], [0, 0, 1, 1], [], []>} : vector<2x256xbf16>, vector<256x10xbf16>, vector<2x10xf32> -> vector<2x10xf32>
    %c0_9 = arith.constant 0 : index
    %c0_10 = arith.constant 0 : index
    %12 = vector.load %arg5[%c0_9, %c0_10] : memref<1x10xf32, #tpu.memory_space<vmem>>, vector<1x10xf32>
    %13 = vector.broadcast %12 : vector<1x10xf32> to vector<2x10xf32>
    %14 = arith.addf %11, %13 : vector<2x10xf32>
    %cst_11 = arith.constant dense<0xFF800000> : vector<2xf32>
    %15 = vector.multi_reduction <maximumf>, %14, %cst_11 [1] : vector<2x10xf32> to vector<2xf32>
    %16 = vector.shape_cast %15 : vector<2xf32> to vector<2x1xf32>
    %17 = vector.broadcast %16 : vector<2x1xf32> to vector<2x10xf32>
    %18 = arith.subf %14, %17 : vector<2x10xf32>
    %19 = math.exp %18 : vector<2x10xf32>
    %cst_12 = arith.constant dense<0.000000e+00> : vector<2xf32>
    %20 = vector.multi_reduction <add>, %19, %cst_12 [1] : vector<2x10xf32> to vector<2xf32>
    %21 = vector.shape_cast %20 : vector<2xf32> to vector<2x1xf32>
    %22 = math.log %21 : vector<2x1xf32>
    %23 = vector.broadcast %22 : vector<2x1xf32> to vector<2x10xf32>
    %24 = arith.subf %18, %23 : vector<2x10xf32>
    %c0_13 = arith.constant 0 : index
    %c0_14 = arith.constant 0 : index
    %25 = vector.load %arg6[%c0_13, %c0_14] : memref<2x10xf32, #tpu.memory_space<vmem>>, vector<2x10xf32>
    tpu.vector_store %arg6[%c0_13, %c0_14], %24 {strides = array<i32>} : memref<2x10xf32, #tpu.memory_space<vmem>>, vector<2x10xf32>,
    return
  }
  func.func @transform_0(%arg0: i32) -> (i32, i32) {
    %c0_i32 = arith.constant 0 : i32
    %c0_i32_0 = arith.constant 0 : i32
    return %arg0, %c0_i32 : i32, i32
  }
  func.func @transform_1(%arg0: i32) -> (i32, i32) {
    %c0_i32 = arith.constant 0 : i32
    %c0_i32_0 = arith.constant 0 : i32
    %c0_i32_1 = arith.constant 0 : i32
    return %c0_i32, %c0_i32_0 : i32, i32
  }
  func.func @transform_2(%arg0: i32) -> (i32, i32) {
    %c0_i32 = arith.constant 0 : i32
    %c0_i32_0 = arith.constant 0 : i32
    %c0_i32_1 = arith.constant 0 : i32
    return %c0_i32, %c0_i32_0 : i32, i32
  }
  func.func @transform_3(%arg0: i32) -> (i32, i32) {
    %c0_i32 = arith.constant 0 : i32
    %c0_i32_0 = arith.constant 0 : i32
    %c0_i32_1 = arith.constant 0 : i32
    return %c0_i32, %c0_i32_0 : i32, i32
  }
  func.func @transform_4(%arg0: i32) -> (i32, i32) {
    %c0_i32 = arith.constant 0 : i32
    %c0_i32_0 = arith.constant 0 : i32
    %c0_i32_1 = arith.constant 0 : i32
    return %c0_i32, %c0_i32_0 : i32, i32
  }
  func.func @transform_5(%arg0: i32) -> (i32, i32) {
    %c0_i32 = arith.constant 0 : i32
    %c0_i32_0 = arith.constant 0 : i32
    return %arg0, %c0_i32 : i32, i32
  }
}

</mosaic_0001>

<bundles_post_ra>
// kernel: tpu_custom_call.1
= control target key start
LH: loop header
LB: loop body
LE: loop exit
PB: predicated region body
PF: predicated region fallthrough
CT: control target
= control target key end

     0   :  { %10 = vsyncpa [#allocation3], 0  ;;  %s1586_s0 = inlined_call_operand.vmem [shape: f32[2,784], index: 0, kind: input, shape index: {}]   ;;  %s1587_s1 = inlined_call_operand.hbm [shape: bf16[784,256], index: 1, kind: input, shape index: {}]   ;;  %s1588_s2 = inlined_call_operand.vmem [shape: f32[1,256], index: 2, kind: input, shape index: {}]   ;;  %s1589_s3 = inlined_call_operand.vmem [shape: bf16[256,10], index: 3, kind: input, shape index: {}]   ;;  %s1590_s4 = inlined_call_operand.vmem [shape: f32[1,10], index: 4, kind: input, shape index: {}]   ;;  %s1591_s5 = inlined_call_operand.hbm [shape: f32[2,10], index: 5, kind: output, shape index: {}]  }
   0x1   :  { %11 = vsyncpa [#allocation4], 0  ;;  %s1434_s18 = smov [#allocation2]   ;;  %s1386_s22 = scalar_lea.hbm %s1587_s1, 12544 }
   0x2   :  { %s19_s19 = sshll.u32 %s1434_s18, 4  ;;  %p1387_p0 = scmp.ne.s32.totalorder %s1587_s1, %s1386_s22  ;;  %s20_s19 = int_to_ptr.vmem [resolvable:$true] %s19_s19 }
   0x3   :  { %p1390_p1 = scmp.lt.u32.totalorder %s1386_s22, %s1587_s1 }
   0x5   :  { %p1392_p2 = pnand %p1390_p1, %p1387_p0 }
   0x7   :  { %1395 = shalt.err (!%p1392_p2)
}
   0x8   :  { %s1396_s27 = scalar_lea.vmem %s20_s19, 12544  ;;  %p1401_p4 = scmp.lt.s32.totalorder %s20_s19, %s20_s19 }
   0x9   :  { %p1397_p3 = scmp.ne.s32.totalorder %s20_s19, %s1396_s27  ;;  %p1402_p5 = scmp.lt.s32.totalorder %s1396_s27, %s1396_s27 }
   0xb   :  { %p1403_p6 = por %p1402_p5, %p1401_p4 }
   0xd   :  { %p1404_p7 = pnand %p1403_p6, %p1397_p3 }
   0xf   :  { %1407 = shalt.err (!%p1404_p7)
}
  0x10   :  { %s1435_s28 = smov 128   ;;  %s1436_s29 = smov 8  }
  0x11   :  { %25 = dma.hbm_to_vmem [thread:$0]  %s1587_s1, 12544, %s20_s19, [#allocation3], %s1435_s28, %s1435_s28, %s1436_s29  }
  0x12   :  { %1430 = dma.done.wait [#allocation3], 12544  }
  0x13   :  { %1431 = vsyncadd [#allocation3], 4294954752  ;;  %v1217_v0 = vld [vmem:[#allocation2 + $0x104] ss:$8 sps:$4 sm:$0xff]   ;;  %v1219_v1 = vld [vmem:[#allocation2 + $0x100] ss:$8 sps:$4 sm:$0xff]   ;;  %v44_v13 = vlaneseq }
  0x14   :  { %732 = vmatprep.subr.bf16.mxu0 %v1217_v0  ;;  %v1220_v2 = vld [vmem:[#allocation2 + $0x114] ss:$8 sps:$4 sm:$0xff]   ;;  %v1222_v3 = vld [vmem:[#allocation2 + $0x110] ss:$8 sps:$4 sm:$0xff]   ;;  %v1223_v4 = vld [vmem:[#allocation2 + $0x124] ss:$8 sps:$4 sm:$0xff]  }
  0x15   :  { %733 = vmatpush1.bf16.msra.mxu0 %v1219_v1  ;;  %v1225_v5 = vld [vmem:[#allocation2 + $0x120] ss:$8 sps:$4 sm:$0xff]   ;;  %v1226_v6 = vld [vmem:[#allocation2 + $0x134] ss:$8 sps:$4 sm:$0xff]   ;;  %v1228_v7 = vld [vmem:[#allocation2 + $0x130] ss:$8 sps:$4 sm:$0xff]  }
  0x16   :  { %734 = vmatprep.subr.bf16.mxu0 %v1220_v2  ;;  %v1229_v8 = vld [vmem:[#allocation2 + $0x144] ss:$8 sps:$4 sm:$0xff]   ;;  %v1231_v9 = vld [vmem:[#allocation2 + $0x140] ss:$8 sps:$4 sm:$0xff]   ;;  %v1232_v10 = vld [vmem:[#allocation2 + $0x154] ss:$8 sps:$4 sm:$0xff]  }
  0x17   :  { %v1437_v11 = vmov 1983009808   ;;  %v1234_v14 = vld [vmem:[#allocation2 + $0x150] ss:$8 sps:$4 sm:$0xff]   ;;  %v1259_v15 = vld [vmem:[#allocation2 + $0x4] ss:$8 sps:$4 sm:$0xff]  }
  0x18   :  { %v42_v12 = vunpack.c.l.s4 %v1437_v11  ;;  %v1261_v16 = vld [vmem:[#allocation2] ss:$8 sps:$4 sm:$0xff]   ;;  %v1235_v17 = vld [vmem:[#allocation2 + $0x164] ss:$8 sps:$4 sm:$0xff]   ;;  %v1482_v19 = vshrl.u32 %v44_v13, 7  ;;  %691 = vmatprep.subr.bf16.mxu1 %v1259_v15  ;;  %vm687_vm0 = vcmask 130048  }
  0x19   :  { %735 = vmatpush1.bf16.msra.mxu0 %v1222_v3  ;;  %692 = vmatpush1.bf16.msra.mxu1 %v1261_v16  ;;  %v1265_v20 = vld [vmem:[#allocation2 + $0x14] ss:$8 sps:$4 sm:$0xff]   ;;  %v1267_v21 = vld [vmem:[#allocation2 + $0x10] ss:$8 sps:$4 sm:$0xff]   ;;  %v1237_v22 = vld [vmem:[#allocation2 + $0x160] ss:$8 sps:$4 sm:$0xff]  }
  0x1a   :  { %736 = vmatprep.subr.bf16.mxu0 %v1223_v4  ;;  %v43_v18 = vunpack.c.0.s8 %v42_v12  ;;  %v1238_v23 = vld [vmem:[#allocation2 + $0x174] ss:$8 sps:$4 sm:$0xff]   ;;  %693 = vmatprep.subr.bf16.mxu1 %v1265_v20  ;;  %v1271_v24 = vld [vmem:[#allocation2 + $0x24] ss:$8 sps:$4 sm:$0xff]   ;;  %v1240_v27 = vld [vmem:[#allocation2 + $0x170] ss:$8 sps:$4 sm:$0xff]  }
  0x1b   :  { %v36_v26 = vld [vmem:[%s1586_s0] sm:$0xff]  ;;  %v1278_v31 = vld [vmem:[#allocation2 + $0x34] ss:$8 sps:$4 sm:$0xff]   ;;  %v1280_v37 = vld [vmem:[#allocation2 + $0x30] ss:$8 sps:$4 sm:$0xff]   ;;  %vm1034_vm1 = vcmask 74752  }
  0x1c   :  { %v1485_v25 = vsub.s32 %v43_v18, %v1482_v19  ;;  %v1273_v28 = vld [vmem:[#allocation2 + $0x20] ss:$8 sps:$4 sm:$0xff]   ;;  %v40_v29 = vcombine.high %v36_v26, %v36_v26  ;;  %v1241_v32 = vld [vmem:[#allocation2 + $0x184] ss:$8 sps:$4 sm:$0xff]   ;;  %v1244_v40 = vld [vmem:[#allocation2 + $0x194] ss:$8 sps:$4 sm:$0xff]  }
  0x1d   :  { %737 = vmatpush1.bf16.msra.mxu0 %v1225_v5  ;;  %694 = vmatpush1.bf16.msra.mxu1 %v1267_v21  ;;  %v1243_v35 = vld [vmem:[#allocation2 + $0x180] ss:$8 sps:$4 sm:$0xff]   ;;  %v1284_v39 = vld [vmem:[#allocation2 + $0x44] ss:$8 sps:$4 sm:$0xff]   ;;  %v1246_v42 = vld [vmem:[#allocation2 + $0x190] ss:$8 sps:$4 sm:$0xff]  }
  0x1e   :  { %738 = vmatprep.subr.bf16.mxu0 %v1226_v6  ;;  %v1491_v30 = vrot.slane %v36_v26, %v1485_v25  ;;  %695 = vmatprep.subr.bf16.mxu1 %v1271_v24  ;;  %v1494_v33 = vrot.slane %v40_v29, %v1485_v25  ;;  %v1286_v43 = vld [vmem:[#allocation2 + $0x40] ss:$8 sps:$4 sm:$0xff]   ;;  %v1290_v44 = vld [vmem:[#allocation2 + $0x54] ss:$8 sps:$4 sm:$0xff]   ;;  %v1247_v45 = vld [vmem:[#allocation2 + $0x1a4] ss:$8 sps:$4 sm:$0xff]  }
  0x1f   :  { %v1249_v46 = vld [vmem:[#allocation2 + $0x1a0] ss:$8 sps:$4 sm:$0xff]   ;;  %v1292_v47 = vld [vmem:[#allocation2 + $0x50] ss:$8 sps:$4 sm:$0xff]   ;;  %v1296_v48 = vld [vmem:[#allocation2 + $0x64] ss:$8 sps:$4 sm:$0xff]  }
  0x20   :  { %v55_v34 = vcombine.high %v1491_v30, %v1491_v30  ;;  %v56_v36 = vcombine.high %v1494_v33, %v1494_v33  ;;  %v1250_v49 = vld [vmem:[#allocation2 + $0x1b4] ss:$8 sps:$4 sm:$0xff]   ;;  %v1252_v50 = vld [vmem:[#allocation2 + $0x1b0] ss:$8 sps:$4 sm:$0xff]   ;;  %v1298_v51 = vld [vmem:[#allocation2 + $0x60] ss:$8 sps:$4 sm:$0xff]  }
  0x21   :  { %739 = vmatpush1.bf16.msra.mxu0 %v1228_v7  ;;  %696 = vmatpush1.bf16.msra.mxu1 %v1273_v28  ;;  %v1302_v52 = vld [vmem:[#allocation2 + $0x74] ss:$8 sps:$4 sm:$0xff]   ;;  %v1253_v53 = vld [vmem:[#allocation2 + $0x1c4] ss:$8 sps:$4 sm:$0xff]   ;;  %v1255_v54 = vld [vmem:[#allocation2 + $0x1c0] ss:$8 sps:$4 sm:$0xff]   ;;  %v82_v7 = vpack.c.bf16 %v1494_v33, %v1494_v33 }
  0x22   :  { %740 = vmatprep.subr.bf16.mxu0 %v1229_v8  ;;  %v81_v38 = vpack.c.bf16 %v55_v34, %v55_v34  ;;  %697 = vmatprep.subr.bf16.mxu1 %v1278_v31  ;;  %v83_v41 = vpack.c.bf16 %v56_v36, %v56_v36  ;;  %v1304_v55 = vld [vmem:[#allocation2 + $0x70] ss:$8 sps:$4 sm:$0xff]   ;;  %v1308_v56 = vld [vmem:[#allocation2 + $0x84] ss:$8 sps:$4 sm:$0xff]   ;;  %v1256_v57 = vld [vmem:[#allocation2 + $0x1d4] ss:$8 sps:$4 sm:$0xff]   ;;  %v80_v34 = vpack.c.bf16 %v1491_v30, %v1491_v30 }
  0x23   :  { %v1258_v58 = vld [vmem:[#allocation2 + $0x1d0] ss:$8 sps:$4 sm:$0xff]   ;;  %v1310_v59 = vld [vmem:[#allocation2 + $0x80] ss:$8 sps:$4 sm:$0xff]   ;;  %v1314_v60 = vld [vmem:[#allocation2 + $0x94] ss:$8 sps:$4 sm:$0xff]  }
  0x24   :  { %723 = vmatprep.mubr.bf16.mxu1 %v81_v38  ;;  %764 = vmatprep.mubr.bf16.mxu0 %v83_v41  ;;  %v1262_v61 = vld [vmem:[#allocation2 + $0x1e4] ss:$8 sps:$4 sm:$0xff]   ;;  %v1264_v62 = vld [vmem:[#allocation2 + $0x1e0] ss:$8 sps:$4 sm:$0xff]   ;;  %v1316_v63 = vld [vmem:[#allocation2 + $0x90] ss:$8 sps:$4 sm:$0xff]  }
  0x25   :  { %741 = vmatpush1.bf16.msra.mxu0 %v1231_v9  ;;  %698 = vmatpush1.bf16.msra.mxu1 %v1280_v37  ;;  %v1320_v0 = vld [vmem:[#allocation2 + $0xa4] ss:$8 sps:$4 sm:$0xff]   ;;  %v1268_v1 = vld [vmem:[#allocation2 + $0x1f4] ss:$8 sps:$4 sm:$0xff]   ;;  %v1270_v2 = vld [vmem:[#allocation2 + $0x1f0] ss:$8 sps:$4 sm:$0xff]  }
  0x26   :  { %742 = vmatprep.subr.bf16.mxu0 %v1232_v10  ;;  %699 = vmatprep.subr.bf16.mxu1 %v1284_v39  ;;  %v1322_v3 = vld [vmem:[#allocation2 + $0xa0] ss:$8 sps:$4 sm:$0xff]   ;;  %v1326_v4 = vld [vmem:[#allocation2 + $0xb4] ss:$8 sps:$4 sm:$0xff]   ;;  %v1277_v5 = vld [vmem:[#allocation2 + $0x204] ss:$8 sps:$4 sm:$0xff]  }
  0x27   :  { %v1275_v6 = vld [vmem:[#allocation2 + $0x200] ss:$8 sps:$4 sm:$0xff]   ;;  %v1328_v8 = vld [vmem:[#allocation2 + $0xb0] ss:$8 sps:$4 sm:$0xff]   ;;  %v1332_v9 = vld [vmem:[#allocation2 + $0xc4] ss:$8 sps:$4 sm:$0xff]  }
  0x28   :  { %v1283_v10 = vld [vmem:[#allocation2 + $0x214] ss:$8 sps:$4 sm:$0xff]   ;;  %v1281_v11 = vld [vmem:[#allocation2 + $0x210] ss:$8 sps:$4 sm:$0xff]   ;;  %v37_v12 = vld [vmem:[%s1586_s0 + $0x8] sm:$0x3f] }
  0x29   :  { %743 = vmatpush1.bf16.msra.mxu0 %v1234_v14  ;;  %700 = vmatpush1.bf16.msra.mxu1 %v1286_v43  ;;  %v1334_v13 = vld [vmem:[#allocation2 + $0xc0] ss:$8 sps:$4 sm:$0xff]   ;;  %v1506_v14 = vrot.slane %v37_v12, %v1485_v25  ;;  %v1338_v15 = vld [vmem:[#allocation2 + $0xd4] ss:$8 sps:$4 sm:$0xff]   ;;  %v1289_v16 = vld [vmem:[#allocation2 + $0x224] ss:$8 sps:$4 sm:$0xff]  }
  0x2a   :  { %744 = vmatprep.subr.bf16.mxu0 %v1235_v17  ;;  %701 = vmatprep.subr.bf16.mxu1 %v1290_v44  ;;  %v1287_v18 = vld [vmem:[#allocation2 + $0x220] ss:$8 sps:$4 sm:$0xff]   ;;  %v1295_v20 = vld [vmem:[#allocation2 + $0x234] ss:$8 sps:$4 sm:$0xff]   ;;  %v1340_v21 = vld [vmem:[#allocation2 + $0xd0] ss:$8 sps:$4 sm:$0xff]  }
  0x2b   :  { %v72_v17 = vcombine.high %v1506_v14, %v1506_v14  ;;  %v1346_v24 = vld [vmem:[#allocation2 + $0xe0] ss:$8 sps:$4 sm:$0xff]   ;;  %v1293_v26 = vld [vmem:[#allocation2 + $0x230] ss:$8 sps:$4 sm:$0xff]   ;;  %v1301_v28 = vld [vmem:[#allocation2 + $0x244] ss:$8 sps:$4 sm:$0xff]  }
  0x2c   :  { %v1352_v29 = vld [vmem:[#allocation2 + $0xf0] ss:$8 sps:$4 sm:$0xff]   ;;  %v1299_v31 = vld [vmem:[#allocation2 + $0x240] ss:$8 sps:$4 sm:$0xff]   ;;  %v1307_v33 = vld [vmem:[#allocation2 + $0x254] ss:$8 sps:$4 sm:$0xff]  }
  0x2d   :  { %745 = vmatpush1.bf16.msra.mxu0 %v1237_v22  ;;  %702 = vmatpush1.bf16.msra.mxu1 %v1292_v47  ;;  %v85_v22 = vpack.c.bf16 %v72_v17, %v72_v17  ;;  %v1359_v36 = vld [vmem:[#allocation2 + $0x300] ss:$8 sps:$4 sm:$0xff]   ;;  %v1305_v37 = vld [vmem:[#allocation2 + $0x250] ss:$8 sps:$4 sm:$0xff]   ;;  %v1313_v39 = vld [vmem:[#allocation2 + $0x264] ss:$8 sps:$4 sm:$0xff]  }
  0x2e   :  { %746 = vmatprep.subr.bf16.mxu0 %v1238_v23  ;;  %703 = vmatprep.subr.bf16.mxu1 %v1296_v48  ;;  %v1344_v23 = vld [vmem:[#allocation2 + $0xe4] ss:$8 sps:$4 sm:$0xff]   ;;  %v1438_v41 = vmov 0   ;;  %v1311_v30 = vld [vmem:[#allocation2 + $0x260] ss:$8 sps:$4 sm:$0xff]  }
  0x2f   :  { %v1366_v38 = vld [vmem:[%s1589_s3 + $0x40] sm:$0xff]   ;;  %v1369_v47 = vld [vmem:[%s1589_s3 + $0x8] sm:$0xff]  }
  0x30   :  { %v1367_v44 = vld [vmem:[%s1589_s3] sm:$0xff]  }
  0x31   :  { %747 = vmatpush1.bf16.msra.mxu0 %v1240_v27  ;;  %704 = vmatpush1.bf16.msra.mxu1 %v1298_v51  ;;  %v1350_v27 = vld [vmem:[#allocation2 + $0xf4] ss:$8 sps:$4 sm:$0xff]   ;;  %v1323_v48 = vld [vmem:[#allocation2 + $0x280] ss:$8 sps:$4 sm:$0xff]  }
  0x32   :  { %748 = vmatprep.subr.bf16.mxu0 %v1241_v32  ;;  %705 = vmatprep.subr.bf16.mxu1 %v1302_v52  ;;  %v1361_v32 = vld [vmem:[#allocation2 + $0x304] ss:$8 sps:$4 sm:$0xff]   ;;  %v1371_v51 = vld [vmem:[%s1589_s3 + $0x10] sm:$0xff]  }
  0x33   :  { %v1329_v52 = vld [vmem:[#allocation2 + $0x290] ss:$8 sps:$4 sm:$0xff]  }
  0x35   :  { %749 = vmatpush1.bf16.msra.mxu0 %v1243_v35  ;;  %706 = vmatpush1.bf16.msra.mxu1 %v1304_v55  ;;  %v57_v35 = vcombine.high %v37_v12, %v37_v12  ;;  %v1343_v55 = vld [vmem:[#allocation2 + $0x2b4] ss:$8 sps:$4 sm:$0xff]  }
  0x36   :  { %750 = vmatprep.subr.bf16.mxu0 %v1244_v40  ;;  %707 = vmatprep.subr.bf16.mxu1 %v1308_v56  ;;  %v1341_v56 = vld [vmem:[#allocation2 + $0x2b0] ss:$8 sps:$4 sm:$0xff]  }
  0x37   :  { %v71_v40 = vrot.slane %v57_v35, %v1485_v25  ;;  %v1368_v25 = vld [vmem:[%s1589_s3 + $0x48] sm:$0xff]  }
  0x39   :  { %751 = vmatpush1.bf16.msra.mxu0 %v1246_v42  ;;  %708 = vmatpush1.bf16.msra.mxu1 %v1310_v59  ;;  %v1319_v42 = vld [vmem:[#allocation2 + $0x274] ss:$8 sps:$4 sm:$0xff]   ;;  %v86_v43 = vpack.c.bf16 %v71_v40, %v71_v40 }
  0x3a   :  { %752 = vmatprep.subr.bf16.mxu0 %v1247_v45  ;;  %709 = vmatprep.subr.bf16.mxu1 %v1314_v60  ;;  %v1317_v45 = vld [vmem:[#allocation2 + $0x270] ss:$8 sps:$4 sm:$0xff]   ;;  %v1355_v59 = vld [vmem:[#allocation2 + $0x2d4] ss:$8 sps:$4 sm:$0xff]  }
  0x3b   :  { %v1353_v60 = vld [vmem:[#allocation2 + $0x2d0] ss:$8 sps:$4 sm:$0xff]  }
  0x3d   :  { %753 = vmatpush1.bf16.msra.mxu0 %v1249_v46  ;;  %710 = vmatpush1.bf16.msra.mxu1 %v1316_v63  ;;  %v1325_v46 = vld [vmem:[#allocation2 + $0x284] ss:$8 sps:$4 sm:$0xff]   ;;  %v1364_v63 = vld [vmem:[#allocation2 + $0x2f4] ss:$8 sps:$4 sm:$0xff]  }
  0x3e   :  { %754 = vmatprep.subr.bf16.mxu0 %v1250_v49  ;;  %711 = vmatprep.subr.bf16.mxu1 %v1320_v0  ;;  %v1370_v49 = vld [vmem:[%s1589_s3 + $0x50] sm:$0xff]  }
  0x3f   :  { %v1362_v0 = vld [vmem:[#allocation2 + $0x2f0] ss:$8 sps:$4 sm:$0xff]  }
  0x41   :  { %755 = vmatpush1.bf16.msra.mxu0 %v1252_v50  ;;  %712 = vmatpush1.bf16.msra.mxu1 %v1322_v3  ;;  %v1331_v50 = vld [vmem:[#allocation2 + $0x294] ss:$8 sps:$4 sm:$0xff]  }
  0x42   :  { %756 = vmatprep.subr.bf16.mxu0 %v1253_v53  ;;  %713 = vmatprep.subr.bf16.mxu1 %v1326_v4  ;;  %v1337_v53 = vld [vmem:[#allocation2 + $0x2a4] ss:$8 sps:$4 sm:$0xff]   ;;  %v1373_v3 = vld [vmem:[%s1589_s3 + $0x18] sm:$0xff]  }
  0x43   :  { %v1374_v4 = vld [vmem:[%s1589_s3 + $0x60] sm:$0xff]  }
  0x45   :  { %757 = vmatpush1.bf16.msra.mxu0 %v1255_v54  ;;  %714 = vmatpush1.bf16.msra.mxu1 %v1328_v8  ;;  %v1335_v54 = vld [vmem:[#allocation2 + $0x2a0] ss:$8 sps:$4 sm:$0xff]   ;;  %v1378_v8 = vld [vmem:[%s1589_s3 + $0x70] sm:$0xff]  }
  0x46   :  { %758 = vmatprep.subr.bf16.mxu0 %v1256_v57  ;;  %715 = vmatprep.subr.bf16.mxu1 %v1332_v9  ;;  %v1349_v57 = vld [vmem:[#allocation2 + $0x2c4] ss:$8 sps:$4 sm:$0xff]   ;;  %v1379_v9 = vld [vmem:[%s1589_s3 + $0x30] sm:$0xff]  }
  0x49   :  { %759 = vmatpush1.bf16.msra.mxu0 %v1258_v58  ;;  %716 = vmatpush1.bf16.msra.mxu1 %v1334_v13  ;;  %v1347_v58 = vld [vmem:[#allocation2 + $0x2c0] ss:$8 sps:$4 sm:$0xff]  }
  0x4a   :  { %760 = vmatprep.subr.bf16.mxu0 %v1262_v61  ;;  %717 = vmatprep.subr.bf16.mxu1 %v1338_v15  ;;  %v1358_v61 = vld [vmem:[#allocation2 + $0x2e4] ss:$8 sps:$4 sm:$0xff]  }
  0x4d   :  { %761 = vmatpush1.bf16.msra.mxu0 %v1264_v62  ;;  %718 = vmatpush1.bf16.msra.mxu1 %v1340_v21  ;;  %v1356_v62 = vld [vmem:[#allocation2 + $0x2e0] ss:$8 sps:$4 sm:$0xff]   ;;  %v189_v21 = vsub.s32 0, %v1482_v19 }
  0x4e   :  { %762 = vmatprep.subr.bf16.mxu0 %v1268_v1  ;;  %719 = vmatprep.subr.bf16.mxu1 %v1344_v23  ;;  %v84_v1 = vpack.c.bf16 %v1506_v14, %v1506_v14  ;;  %v193_v23 = vsub.s32 1, %v1482_v19 }
  0x51   :  { %763 = vmatpush1.bf16.msra.mxu0 %v1270_v2  ;;  %720 = vmatpush1.bf16.msra.mxu1 %v1346_v24  ;;  %v1372_v2 = vld [vmem:[%s1589_s3 + $0x58] sm:$0xff]  }
  0x52   :  { %773 = vmatprep.subr.bf16.mxu0 %v1277_v5  ;;  %721 = vmatprep.subr.bf16.mxu1 %v1350_v27  ;;  %v1375_v5 = vld [vmem:[%s1589_s3 + $0x20] sm:$0xff]  }
  0x54   :  { %765 = vmatmul.mubr.bf16.vlgmr.msra.gmra.mrb[0].mxu0 %v82_v7  ;;  %v1377_v7 = vld [vmem:[%s1589_s3 + $0x28] sm:$0xff]  }
  0x55   :  { %774 = vmatpush1.bf16.msra.mxu0 %v1275_v6  ;;  %805 = vmatprep.mubr.bf16.mxu0 %v85_v22  ;;  %v1376_v6 = vld [vmem:[%s1589_s3 + $0x68] sm:$0xff]   ;;  %v185_v22 = vld [vmem:[%s1588_s2] sm:$0x3] }
  0x56   :  { %775 = vmatprep.subr.bf16.mxu0 %v1283_v10  ;;  %722 = vmatpush1.bf16.msra.mxu1 %v1352_v29  ;;  %v1380_v10 = vld [vmem:[%s1589_s3 + $0x78] sm:$0xff]   ;;  %v190_v24 = vrot.slane %v185_v22, %v189_v21 }
  0x57   :  { %814 = vmatprep.subr.bf16.mxu1 %v1361_v32 }
  0x59   :  { %776 = vmatpush1.bf16.msra.mxu0 %v1281_v11  ;;  %724 = vmatmul.mubr.bf16.vlgmr.msra.gmra.mrb[0].mxu1 %v80_v34  ;;  %v1381_v11 = vld [vmem:[%s1589_s3 + $0x38] sm:$0xff]  }
  0x5a   :  { %777 = vmatprep.subr.bf16.mxu0 %v1289_v16  ;;  %815 = vmatpush1.bf16.msra.mxu1 %v1359_v36 }
  0x5b   :  { %846 = vmatprep.mubr.bf16.mxu1 %v1438_v41  ;;  %1179 = vmatprep.subr.bf16.mxu1 %v1366_v38 }
  0x5d   :  { %778 = vmatpush1.bf16.msra.mxu0 %v1287_v18 }
  0x5e   :  { %779 = vmatprep.subr.bf16.mxu0 %v1295_v20 }
  0x61   :  { %780 = vmatpush1.bf16.msra.mxu0 %v1293_v26  ;;  %1161 = vmatmul.mubr.msk.bf16.vlgmr.msra.gmra.mrb[4].mxu1 %vm687_vm0, %v86_v43  ;;  %v194_v26 = vrot.slane %v185_v22, %v193_v23 }
  0x62   :  { %781 = vmatprep.subr.bf16.mxu0 %v1301_v28  ;;  %1180 = vmatpush3.bf16.msra.mxu1 %v1367_v44 }
  0x63   :  { %1181 = vmatprep.subr.bf16.mxu1 %v1368_v25 }
  0x65   :  { %782 = vmatpush1.bf16.msra.mxu0 %v1299_v31 }
  0x66   :  { %783 = vmatprep.subr.bf16.mxu0 %v1307_v33  ;;  %1182 = vmatpush3.bf16.msra.mxu1 %v1369_v47 }
  0x67   :  { %1183 = vmatprep.subr.bf16.mxu1 %v1370_v49 }
  0x69   :  { %784 = vmatpush1.bf16.msra.mxu0 %v1305_v37 }
  0x6a   :  { %785 = vmatprep.subr.bf16.mxu0 %v1313_v39  ;;  %1184 = vmatpush3.bf16.msra.mxu1 %v1371_v51 }
  0x6b   :  { %1185 = vmatprep.subr.bf16.mxu1 %v1372_v2 }
  0x6d   :  { %786 = vmatpush1.bf16.msra.mxu0 %v1311_v30 }
  0x6e   :  { %787 = vmatprep.subr.bf16.mxu0 %v1319_v42  ;;  %1186 = vmatpush3.bf16.msra.mxu1 %v1373_v3  ;;  %v1162_v42 = vld [vmem:[%s1590_s4] ss:$0 sm:$0xff]  ;;  %s1439_s4 = smov [#allocation5]  }
  0x6f   :  { %1187 = vmatprep.subr.bf16.mxu1 %v1374_v4  ;;  %s1054_s16 = sshll.u32 %s1439_s4, 4  ;;  %s1055_s16 = int_to_ptr.vmem [resolvable:$true] %s1054_s16 }
  0x70   :  { %s1408_s17 = scalar_lea.vmem %s1055_s16, 32  ;;  %p1413_p9 = scmp.lt.s32.totalorder %s1055_s16, %s1055_s16 }
  0x71   :  { %788 = vmatpush1.bf16.msra.mxu0 %v1317_v45  ;;  %p1409_p8 = scmp.ne.s32.totalorder %s1055_s16, %s1408_s17  ;;  %p1414_p10 = scmp.lt.s32.totalorder %s1408_s17, %s1408_s17 }
  0x72   :  { %789 = vmatprep.subr.bf16.mxu0 %v1325_v46  ;;  %1188 = vmatpush3.bf16.msra.mxu1 %v1375_v5 }
  0x73   :  { %1189 = vmatprep.subr.bf16.mxu1 %v1376_v6  ;;  %p1415_p11 = por %p1414_p10, %p1413_p9 }
  0x75   :  { %790 = vmatpush1.bf16.msra.mxu0 %v1323_v48  ;;  %p1416_p12 = pnand %p1415_p11, %p1409_p8 }
  0x76   :  { %791 = vmatprep.subr.bf16.mxu0 %v1331_v50  ;;  %1190 = vmatpush3.bf16.msra.mxu1 %v1377_v7 }
  0x77   :  { %1191 = vmatprep.subr.bf16.mxu1 %v1378_v8 }
  0x79   :  { %792 = vmatpush1.bf16.msra.mxu0 %v1329_v52 }
  0x7a   :  { %793 = vmatprep.subr.bf16.mxu0 %v1337_v53  ;;  %1192 = vmatpush3.bf16.msra.mxu1 %v1379_v9 }
  0x7b   :  { %1193 = vmatprep.subr.bf16.mxu1 %v1380_v10 }
  0x7d   :  { %794 = vmatpush1.bf16.msra.mxu0 %v1335_v54 }
  0x7e   :  { %795 = vmatprep.subr.bf16.mxu0 %v1343_v55  ;;  %1194 = vmatpush3.bf16.msra.mxu1 %v1381_v11 }
  0x81   :  { %796 = vmatpush1.bf16.msra.mxu0 %v1341_v56 }
  0x82   :  { %797 = vmatprep.subr.bf16.mxu0 %v1349_v57 }
  0x85   :  { %798 = vmatpush1.bf16.msra.mxu0 %v1347_v58 }
  0x86   :  { %799 = vmatprep.subr.bf16.mxu0 %v1355_v59 }
  0x89   :  { %800 = vmatpush1.bf16.msra.mxu0 %v1353_v60 }
  0x8a   :  { %801 = vmatprep.subr.bf16.mxu0 %v1358_v61 }
  0x8d   :  { %802 = vmatpush1.bf16.msra.mxu0 %v1356_v62 }
  0x8e   :  { %803 = vmatprep.subr.bf16.mxu0 %v1364_v63 }
  0x91   :  { %804 = vmatpush1.bf16.msra.mxu0 %v1362_v0 }
  0x94   :  { %806 = vmatmul.mubr.bf16.vlgmr.msra.gmra.mrb[0].mxu0 %v84_v1 }
 0x12c   :  { %v725_v12 = vpop.f32.mrb[0].mxu1 }
 0x12d   :  { %v727_v13 = vpop.f32.mrb[1].mxu1  ;;  %v726_v27 = vadd.f32 %v725_v12, %v190_v24 }
 0x12e   :  { %v729_v14 = vpop.f32.mrb[2].mxu1  ;;  %v728_v28 = vadd.f32 %v727_v13, %v194_v26 }
 0x12f   :  { %v730_v15 = vpop.f32.mrb[3].mxu1 }
 0x134   :  { %v848_v16 = vpop.f32.mrb[4].mxu1 }
 0x135   :  { %v850_v17 = vpop.f32.mrb[5].mxu1 }
 0x136   :  { %v852_v18 = vpop.f32.mrb[6].mxu1 }
 0x137   :  { %v853_v20 = vpop.f32.mrb[7].mxu1 }
 0x167   :  { %v807_v29 = vpop.f32.mrb[0].mxu0 }
 0x168   :  { %v1202_v31 = vadd.f32 %v807_v29, %v726_v27  ;;  %v809_v32 = vpop.f32.mrb[1].mxu0 }
 0x169   :  { %v1205_v33 = vadd.f32 %v809_v32, %v728_v28  ;;  %v811_v34 = vpop.f32.mrb[2].mxu0 }
 0x16a   :  { %v1203_v35 = vadd.f32 %v1202_v31, %v848_v16  ;;  %v812_v36 = vpop.f32.mrb[3].mxu0 }
 0x16b   :  { %v1206_v37 = vadd.f32 %v1205_v33, %v850_v17 }
 0x16c   :  { %v855_v38 = vmax.f32 %v1203_v35, 0.0 }
 0x16d   :  { %v856_v39 = vmax.f32 %v1206_v37, 0.0 }
 0x16e   :  { %v857_v41 = vpack.c.bf16 %v855_v38, %v855_v38 }
 0x16f   :  { %v858_v40 = vpack.c.bf16 %v856_v39, %v856_v39 }
 0x171   :  { %1026 = vmatprep.mubr.bf16.mxu1 %v858_v40 }
 0x172   :  { %1027 = vmatmul.mubr.bf16.vlgmr.msra.gmra.mrb[8].mxu1 %v857_v41 }
 0x245   :  { %v1195_v30 = vpop.f32.mrb[8].mxu1 }
 0x246   :  { %v1196_v19 = vpop.f32.mrb[9].mxu1 }
 0x247   :  { %v1197_v43 = vadd.f32 %v1196_v19, %v1195_v30  ;;  %v1198_v44 = vpop.f32.mrb[10].mxu1 }
 0x248   :  { %v1199_v45 = vpop.f32.mrb[11].mxu1 }
 0x249   :  { %v1029_v25 = vadd.f32 %v1197_v43, %v1162_v42 }
 0x24b   :  { %v1035_v46 = vsel %vm1034_vm1, %v1029_v25, -inf }
 0x24c   :  { %1036 = vmax.xlane.f32.xlu0 %v1035_v46 }
 0x2d9   :  { %v1037_v47 = vpop.xlane.xlu0 %1036 }
 0x2da   :  { %v1038_v48 = vsub.f32 %v1029_v25, %v1037_v47 }
 0x2dc   :  { %v1039_v49 = vmul.f32 1.442695, %v1038_v48 }
 0x2de   :  { %1382 = vpow2.f32 %v1039_v49 }
 0x2e8   :  { %v1383_v50 = vpop.eup %1382 }
 0x2e9   :  { %v1041_v51 = vsel %vm1034_vm1, %v1383_v50, 0.0 }
 0x2ea   :  { %1042 = vadd.xlane.f32.xlu0 %v1041_v51 }
 0x377   :  { %v1043_v52 = vpop.xlane.xlu0 %1042 }
 0x378   :  { %1384 = vlog2.f32 %v1043_v52 }
 0x382   :  { %v1385_v53 = vpop.eup %1384 }
 0x383   :  { %v1045_v54 = vmul.f32 0.6931472, %v1385_v53 }
 0x385   :  { %v1046_v55 = vsub.f32 %v1038_v48, %v1045_v54 }
 0x387   :  { %1047 = vst.msk [vmem:[#allocation5] sm:$0x3] %vm1034_vm1, %v1046_v55 }
 0x388   :  { %1419 = shalt.err (!%p1416_p12)
}
 0x389   :  { %s1420_s20 = scalar_lea.hbm %s1591_s5, 32 }
 0x38a   :  { %p1421_p13 = scmp.ne.s32.totalorder %s1591_s5, %s1420_s20  ;;  %p1424_p0 = scmp.lt.u32.totalorder %s1420_s20, %s1591_s5 }
 0x38c   :  { %p1426_p1 = pnand %p1424_p0, %p1421_p13 }
 0x38e   :  { %1429 = shalt.err (!%p1426_p1)
}
 0x38f   :  { %1057 = dma.vmem_to_hbm [thread:$0]  %s1055_s16, 32, %s1591_s5, [#allocation4]  }
 0x390   :  { %1432 = dma.done.wait [#allocation4], 32  }
 0x391   :  { %1433 = vsyncadd [#allocation4], 4294967264 }
 0x392   :  { %1061 = vsyncpa [#allocation3], 1 }
 0x393   :  { %1062 = vsyncpa [#allocation4], 1 }

</bundles_post_ra>
